<compile_context>
chip_gen: v7x
topology: tpu7x:2x2x1
jax: 0.10.0
libtpu: 0.0.40
codegen_flags: <defaults>
</compile_context>

<pallas_src>
import jax
import jax.numpy as jnp
from jax.experimental import pallas as pl
from jax.experimental.pallas import tpu as pltpu


# ------------------------------- helpers -------------------------------------
def _round_up(n, m):
    return ((n + m - 1) // m) * m


def _pad2(a, rows, cols):
    r, c = a.shape
    if r == rows and c == cols:
        return a
    return jnp.pad(a, ((0, rows - r), (0, cols - c)))


def _pick_tm(rows):
    # largest row tile (multiple of 8, <=1024) that evenly divides R
    for tm in (1024, 512, 256, 128, 64, 32, 16, 8):
        if rows % tm == 0:
            return tm
    return rows


# ----------------------------- Pallas kernel ----------------------------------
def _vae_kernel(
    x_ref,       # (TM, F)        bf16 flattened frames
    we_ref,      # (F, HP)        bf16 encoder weight (padded)
    be_ref,      # (1, HP)        f32  encoder bias
    wms_ref,     # (HP, 2*ZP)     bf16 fused [mu | sigma] weight
    bms_ref,     # (1, 2*ZP)      f32  fused [mu | sigma] bias
    noise_ref,   # (TM, ZP)       f32  standard-normal noise (zero-padded lanes)
    wd_ref,      # (ZP, F)        bf16 decoder weight
    bd_ref,      # (1, F)         f32  decoder bias
    xrec_ref,    # out: (TM, F)       f32
    zml_ref,     # out: (TM, 3*ZP)    f32  packed [z | mu | logsig]
):
    ZP = noise_ref.shape[-1]

    # --- encoder: h = relu(x @ We + be)  (bf16 MXU, f32 accumulate) ---
    h = jnp.dot(x_ref[...], we_ref[...], preferred_element_type=jnp.float32)
    h = jnp.maximum(h + be_ref[...], 0.0)

    # --- fused reparameterization matmul: [mu | logsig] = h @ Wms + bms ---
    ms = jnp.dot(h.astype(jnp.bfloat16), wms_ref[...],
                 preferred_element_type=jnp.float32) + bms_ref[...]
    mu = ms[:, :ZP]
    logsig = ms[:, ZP:]

    # --- z = mu + noise * exp(0.5 * logsig)   (all f32) ---
    sig = jnp.exp(0.5 * logsig)
    z = mu + noise_ref[...] * sig

    # --- decoder: x_recon = sigmoid(z @ Wd + bd) ---
    rec = jnp.dot(z.astype(jnp.bfloat16), wd_ref[...],
                  preferred_element_type=jnp.float32) + bd_ref[...]
    xrec_ref[...] = jax.nn.sigmoid(rec)

    # --- single lane-dense store of the narrow outputs ---
    zml_ref[...] = jnp.concatenate([z, mu, logsig], axis=-1)


# ------------------------------ Host wrapper ----------------------------------
def vae_forward(x, params, noise):
    """x: (B, T, C, H, W) f32; noise: (B*T, h_dim+z_dim) f32.

    Returns (x_recon, z_t, mu_t, logsigma_t) exactly like VAE.forward.
    """
    B, T, C, H, W = x.shape
    R = B * T
    F = C * H * W
    hdim = params["we"].shape[1]        # logical h_dim
    zfull = params["wmu"].shape[1]      # logical h_dim + z_dim

    HP = _round_up(hdim, 128)
    ZP = _round_up(zfull, 128)

    # --- pack / pad / fuse / cast parameters (zero padding -> exact numerics) ---
    we = _pad2(params["we"], F, HP).astype(jnp.bfloat16)
    be = _pad2(params["be"], 1, HP)                                  # f32
    wms = jnp.concatenate(
        [_pad2(params["wmu"], HP, ZP), _pad2(params["wsig"], HP, ZP)], axis=1
    ).astype(jnp.bfloat16)
    bms = jnp.concatenate(
        [_pad2(params["bmu"], 1, ZP), _pad2(params["bsig"], 1, ZP)], axis=1)   # f32
    wd = _pad2(params["wd"], ZP, F).astype(jnp.bfloat16)
    bd = params["bd"]                                                # (1, F) f32

    x_flat = x.reshape(R, F).astype(jnp.bfloat16)
    noise_p = _pad2(noise, R, ZP)                                    # f32, zero-padded lanes

    TM = _pick_tm(R)
    grid = (R // TM,)

    row_spec = lambda w: pl.BlockSpec((TM, w), lambda i: (i, 0))     # tiled along rows
    pin_spec = lambda s: pl.BlockSpec(s, lambda i: (0, 0))           # resident weights

    in_specs = [
        row_spec(F),               # x
        pin_spec((F, HP)),         # We
        pin_spec((1, HP)),         # be
        pin_spec((HP, 2 * ZP)),    # Wms (fused mu|sigma)
        pin_spec((1, 2 * ZP)),     # bms
        row_spec(ZP),              # noise
        pin_spec((ZP, F)),         # Wd
        pin_spec((1, F)),          # bd
    ]
    out_specs = [
        row_spec(F),               # x_recon
        row_spec(3 * ZP),          # packed [z | mu | logsig]
    ]
    out_shape = (
        jax.ShapeDtypeStruct((R, F), jnp.float32),
        jax.ShapeDtypeStruct((R, 3 * ZP), jnp.float32),
    )

    ins = (x_flat, we, be, wms, bms, noise_p, wd, bd)
    bytes_accessed = int(
        sum(a.size * a.dtype.itemsize for a in ins) + (R * F + R * 3 * ZP) * 4
    )
    cost = pl.CostEstimate(
        flops=int(2 * R * (F * HP + HP * 2 * ZP + ZP * F)),
        transcendentals=int(R * (ZP + F)),        # exp + sigmoid
        bytes_accessed=bytes_accessed,
    )

    xrec, zml = pl.pallas_call(
        _vae_kernel,
        grid=grid,
        in_specs=in_specs,
        out_specs=out_specs,
        out_shape=out_shape,
        compiler_params=pltpu.CompilerParams(
            dimension_semantics=("parallel",),        # shard rows across TCs (v7x)
            vmem_limit_bytes=48 * 1024 * 1024,        # under v7x's 64 MiB physical VMEM
        ),
        cost_estimate=cost,
    )(*ins)

    x_recon = xrec.reshape(B, T, C, H, W)
    z_t = zml[:, 0:zfull].reshape(B, T, zfull)
    mu_t = zml[:, ZP:ZP + zfull].reshape(B, T, zfull)
    logsigma_t = zml[:, 2 * ZP:2 * ZP + zfull].reshape(B, T, zfull)
    return x_recon, z_t, mu_t, logsigma_t


# --------------------------- Deterministic init --------------------------------
def kaiming_normal(key, fan_in, fan_out):
    # torch.nn.init.kaiming_normal_(a=0, mode='fan_in'): std = sqrt(2 / fan_in)
    # stored as [in, out] (transpose of torch.nn.Linear's [out, in]).
    std = jnp.sqrt(2.0 / fan_in)
    return jax.random.normal(key, (fan_in, fan_out), dtype=jnp.float32) * std


def make_params(key, feat, h_dim, z_dim):
    zfull = h_dim + z_dim  # mu_t / sigma_t output h_dim + z_dim, as in the module
    k = jax.random.split(key, 4)
    return {
        "we": kaiming_normal(k[0], feat, h_dim),
        "be": jnp.zeros((1, h_dim), jnp.float32),
        "wmu": kaiming_normal(k[1], h_dim, zfull),
        "bmu": jnp.zeros((1, zfull), jnp.float32),
        "wsig": kaiming_normal(k[2], h_dim, zfull),
        "bsig": jnp.zeros((1, zfull), jnp.float32),
        "wd": kaiming_normal(k[3], zfull, feat),
        "bd": jnp.zeros((1, feat), jnp.float32),
    }


# ----------------------------------- Main ---------------------------------------
if __name__ == "__main__":
    # config: channels=4, h_dim=32, z_dim=16, frames 16x16, batch=2, time=8
    B, T, C, H, W = 2, 8, 4, 16, 16
    h_dim, z_dim = 32, 16
    feat = C * H * W

    key = jax.random.PRNGKey(0)
    kx, knoise, kparam = jax.random.split(key, 3)

    x = jax.random.uniform(kx, (B, T, C, H, W), dtype=jnp.float32)
    noise = jax.random.normal(knoise, (B * T, h_dim + z_dim), dtype=jnp.float32)
    params = make_params(kparam, feat, h_dim, z_dim)

    x_recon, z_t, mu_t, logsigma_t = vae_forward(x, params, noise)
    jax.block_until_ready((x_recon, z_t, mu_t, logsigma_t))

    assert x_recon.shape == (B, T, C, H, W)
    assert z_t.shape == (B, T, h_dim + z_dim)
    assert mu_t.shape == (B, T, h_dim + z_dim)
    assert logsigma_t.shape == (B, T, h_dim + z_dim)
    assert bool(jnp.all(jnp.isfinite(x_recon)))
    print("KERNEL_OK")
</pallas_src>

<mosaic_0001>
module attributes {stable_mosaic.version = 11 : i64} {
  func.func @_vae_kernel(%arg0: i32, %arg1: memref<16x1024xbf16, #tpu.memory_space<vmem>>, %arg2: memref<1024x128xbf16, #tpu.memory_space<vmem>>, %arg3: memref<1x128xf32, #tpu.memory_space<vmem>>, %arg4: memref<128x256xbf16, #tpu.memory_space<vmem>>, %arg5: memref<1x256xf32, #tpu.memory_space<vmem>>, %arg6: memref<16x128xf32, #tpu.memory_space<vmem>>, %arg7: memref<128x1024xbf16, #tpu.memory_space<vmem>>, %arg8: memref<1x1024xf32, #tpu.memory_space<vmem>>, %arg9: memref<16x1024xf32, #tpu.memory_space<vmem>>, %arg10: memref<16x384xf32, #tpu.memory_space<vmem>>) attributes {dimension_semantics = [#tpu.dimension_semantics<parallel>], iteration_bounds = array<i64: 1>, scalar_prefetch = 0 : i64, scratch_operands = 0 : i64, tpu.core_type = #tpu.core_type<tc>, window_params = [{transform_indices = @transform_0, window_bounds = array<i64: 16, 1024>}, {pipeline_mode = #tpu.pipeline_mode<synchronous>, transform_indices = @transform_1, window_bounds = array<i64: 1024, 128>}, {pipeline_mode = #tpu.pipeline_mode<synchronous>, transform_indices = @transform_2, window_bounds = array<i64: 1, 128>}, {pipeline_mode = #tpu.pipeline_mode<synchronous>, transform_indices = @transform_3, window_bounds = array<i64: 128, 256>}, {pipeline_mode = #tpu.pipeline_mode<synchronous>, transform_indices = @transform_4, window_bounds = array<i64: 1, 256>}, {transform_indices = @transform_5, window_bounds = array<i64: 16, 128>}, {pipeline_mode = #tpu.pipeline_mode<synchronous>, transform_indices = @transform_6, window_bounds = array<i64: 128, 1024>}, {pipeline_mode = #tpu.pipeline_mode<synchronous>, transform_indices = @transform_7, window_bounds = array<i64: 1, 1024>}, {transform_indices = @transform_8, window_bounds = array<i64: 16, 1024>}, {transform_indices = @transform_9, window_bounds = array<i64: 16, 384>}]} {
    %c0 = arith.constant 0 : index
    %c0_0 = arith.constant 0 : index
    %0 = vector.load %arg1[%c0, %c0_0] : memref<16x1024xbf16, #tpu.memory_space<vmem>>, vector<16x1024xbf16>
    %c0_1 = arith.constant 0 : index
    %c0_2 = arith.constant 0 : index
    %1 = vector.load %arg2[%c0_1, %c0_2] : memref<1024x128xbf16, #tpu.memory_space<vmem>>, vector<1024x128xbf16>
    %cst = arith.constant dense<0.000000e+00> : vector<16x128xf32>
    %2 = tpu.matmul %0, %1, %cst {dimension_numbers = #tpu.dot_dimension_numbers<[1], [0], [0], [1], [0, 0, 1, 1], [], []>} : vector<16x1024xbf16>, vector<1024x128xbf16>, vector<16x128xf32> -> vector<16x128xf32>
    %c0_3 = arith.constant 0 : index
    %c0_4 = arith.constant 0 : index
    %3 = vector.load %arg3[%c0_3, %c0_4] : memref<1x128xf32, #tpu.memory_space<vmem>>, vector<1x128xf32>
    %4 = vector.broadcast %3 : vector<1x128xf32> to vector<16x128xf32>
    %5 = arith.addf %2, %4 : vector<16x128xf32>
    %cst_5 = arith.constant 0.000000e+00 : f32
    %6 = vector.broadcast %cst_5 : f32 to vector<16x128xf32>
    %7 = arith.maximumf %5, %6 : vector<16x128xf32>
    %8 = arith.truncf %7 : vector<16x128xf32> to vector<16x128xbf16>
    %c0_6 = arith.constant 0 : index
    %c0_7 = arith.constant 0 : index
    %9 = vector.load %arg4[%c0_6, %c0_7] : memref<128x256xbf16, #tpu.memory_space<vmem>>, vector<128x256xbf16>
    %cst_8 = arith.constant dense<0.000000e+00> : vector<16x256xf32>
    %10 = tpu.matmul %8, %9, %cst_8 {dimension_numbers = #tpu.dot_dimension_numbers<[1], [0], [0], [1], [0, 0, 1, 1], [], []>} : vector<16x128xbf16>, vector<128x256xbf16>, vector<16x256xf32> -> vector<16x256xf32>
    %c0_9 = arith.constant 0 : index
    %c0_10 = arith.constant 0 : index
    %11 = vector.load %arg5[%c0_9, %c0_10] : memref<1x256xf32, #tpu.memory_space<vmem>>, vector<1x256xf32>
    %12 = vector.broadcast %11 : vector<1x256xf32> to vector<16x256xf32>
    %13 = arith.addf %10, %12 : vector<16x256xf32>
    %14 = vector.extract_strided_slice %13 {offsets = [0, 0], sizes = [16, 128], strides = [1, 1]} : vector<16x256xf32> to vector<16x128xf32>
    %15 = vector.extract_strided_slice %13 {offsets = [0, 128], sizes = [16, 128], strides = [1, 1]} : vector<16x256xf32> to vector<16x128xf32>
    %cst_11 = arith.constant 5.000000e-01 : f32
    %16 = vector.broadcast %cst_11 : f32 to vector<16x128xf32>
    %17 = arith.mulf %16, %15 : vector<16x128xf32>
    %18 = math.exp %17 : vector<16x128xf32>
    %c0_12 = arith.constant 0 : index
    %c0_13 = arith.constant 0 : index
    %19 = vector.load %arg6[%c0_12, %c0_13] : memref<16x128xf32, #tpu.memory_space<vmem>>, vector<16x128xf32>
    %20 = arith.mulf %19, %18 : vector<16x128xf32>
    %21 = arith.addf %14, %20 : vector<16x128xf32>
    %22 = arith.truncf %21 : vector<16x128xf32> to vector<16x128xbf16>
    %c0_14 = arith.constant 0 : index
    %c0_15 = arith.constant 0 : index
    %23 = vector.load %arg7[%c0_14, %c0_15] : memref<128x1024xbf16, #tpu.memory_space<vmem>>, vector<128x1024xbf16>
    %cst_16 = arith.constant dense<0.000000e+00> : vector<16x1024xf32>
    %24 = tpu.matmul %22, %23, %cst_16 {dimension_numbers = #tpu.dot_dimension_numbers<[1], [0], [0], [1], [0, 0, 1, 1], [], []>} : vector<16x128xbf16>, vector<128x1024xbf16>, vector<16x1024xf32> -> vector<16x1024xf32>
    %c0_17 = arith.constant 0 : index
    %c0_18 = arith.constant 0 : index
    %25 = vector.load %arg8[%c0_17, %c0_18] : memref<1x1024xf32, #tpu.memory_space<vmem>>, vector<1x1024xf32>
    %26 = vector.broadcast %25 : vector<1x1024xf32> to vector<16x1024xf32>
    %27 = arith.addf %24, %26 : vector<16x1024xf32>
    %28 = arith.negf %27 : vector<16x1024xf32>
    %29 = math.exp %28 : vector<16x1024xf32>
    %cst_19 = arith.constant 1.000000e+00 : f32
    %30 = vector.broadcast %cst_19 : f32 to vector<16x1024xf32>
    %31 = arith.addf %30, %29 : vector<16x1024xf32>
    %32 = arith.divf %30, %31 : vector<16x1024xf32>
    %c0_20 = arith.constant 0 : index
    %c0_21 = arith.constant 0 : index
    %33 = vector.load %arg9[%c0_20, %c0_21] : memref<16x1024xf32, #tpu.memory_space<vmem>>, vector<16x1024xf32>
    tpu.vector_store %arg9[%c0_20, %c0_21], %32 {strides = array<i32>} : memref<16x1024xf32, #tpu.memory_space<vmem>>, vector<16x1024xf32>,
    %34 = tpu.concatenate %21, %14, %15 in 1 : vector<16x128xf32>, vector<16x128xf32>, vector<16x128xf32> -> vector<16x384xf32>
    %c0_22 = arith.constant 0 : index
    %c0_23 = arith.constant 0 : index
    %35 = vector.load %arg10[%c0_22, %c0_23] : memref<16x384xf32, #tpu.memory_space<vmem>>, vector<16x384xf32>
    tpu.vector_store %arg10[%c0_22, %c0_23], %34 {strides = array<i32>} : memref<16x384xf32, #tpu.memory_space<vmem>>, vector<16x384xf32>,
    return
  }
  func.func @transform_0(%arg0: i32) -> (i32, i32) {
    %c0_i32 = arith.constant 0 : i32
    %c0_i32_0 = arith.constant 0 : i32
    return %arg0, %c0_i32 : i32, i32
  }
  func.func @transform_1(%arg0: i32) -> (i32, i32) {
    %c0_i32 = arith.constant 0 : i32
    %c0_i32_0 = arith.constant 0 : i32
    %c0_i32_1 = arith.constant 0 : i32
    return %c0_i32, %c0_i32_0 : i32, i32
  }
  func.func @transform_2(%arg0: i32) -> (i32, i32) {
    %c0_i32 = arith.constant 0 : i32
    %c0_i32_0 = arith.constant 0 : i32
    %c0_i32_1 = arith.constant 0 : i32
    return %c0_i32, %c0_i32_0 : i32, i32
  }
  func.func @transform_3(%arg0: i32) -> (i32, i32) {
    %c0_i32 = arith.constant 0 : i32
    %c0_i32_0 = arith.constant 0 : i32
    %c0_i32_1 = arith.constant 0 : i32
    return %c0_i32, %c0_i32_0 : i32, i32
  }
  func.func @transform_4(%arg0: i32) -> (i32, i32) {
    %c0_i32 = arith.constant 0 : i32
    %c0_i32_0 = arith.constant 0 : i32
    %c0_i32_1 = arith.constant 0 : i32
    return %c0_i32, %c0_i32_0 : i32, i32
  }
  func.func @transform_5(%arg0: i32) -> (i32, i32) {
    %c0_i32 = arith.constant 0 : i32
    %c0_i32_0 = arith.constant 0 : i32
    return %arg0, %c0_i32 : i32, i32
  }
  func.func @transform_6(%arg0: i32) -> (i32, i32) {
    %c0_i32 = arith.constant 0 : i32
    %c0_i32_0 = arith.constant 0 : i32
    %c0_i32_1 = arith.constant 0 : i32
    return %c0_i32, %c0_i32_0 : i32, i32
  }
  func.func @transform_7(%arg0: i32) -> (i32, i32) {
    %c0_i32 = arith.constant 0 : i32
    %c0_i32_0 = arith.constant 0 : i32
    %c0_i32_1 = arith.constant 0 : i32
    return %c0_i32, %c0_i32_0 : i32, i32
  }
  func.func @transform_8(%arg0: i32) -> (i32, i32) {
    %c0_i32 = arith.constant 0 : i32
    %c0_i32_0 = arith.constant 0 : i32
    return %arg0, %c0_i32 : i32, i32
  }
  func.func @transform_9(%arg0: i32) -> (i32, i32) {
    %c0_i32 = arith.constant 0 : i32
    %c0_i32_0 = arith.constant 0 : i32
    return %arg0, %c0_i32 : i32, i32
  }
}

</mosaic_0001>

<bundles_post_ra>
// kernel: tpu_custom_call.1
= control target key start
LH: loop header
LB: loop body
LE: loop exit
PB: predicated region body
PF: predicated region fallthrough
CT: control target
= control target key end

     0   :  { %15 = vsyncpa [#allocation3], 0  ;;  %s2576_s0 = inlined_call_operand.hbm [shape: bf16[16,1024], index: 0, kind: input, shape index: {}]   ;;  %s2577_s1 = inlined_call_operand.hbm [shape: bf16[1024,128], index: 1, kind: input, shape index: {}]   ;;  %s2578_s2 = inlined_call_operand.hbm [shape: f32[1,128], index: 2, kind: input, shape index: {}]   ;;  %s2579_s3 = inlined_call_operand.hbm [shape: bf16[128,256], index: 3, kind: input, shape index: {}]   ;;  %s2580_s4 = inlined_call_operand.vmem [shape: f32[1,256], index: 4, kind: input, shape index: {}]   ;;  %s2581_s5 = inlined_call_operand.vmem [shape: f32[16,128], index: 5, kind: input, shape index: {}]   ;;  %s2582_s6 = inlined_call_operand.hbm [shape: bf16[128,1024], index: 6, kind: input, shape index: {}]   ;;  %s2583_s7 = inlined_call_operand.vmem [shape: f32[1,1024], index: 7, kind: input, shape index: {}]   ;;  %s2584_s8 = inlined_call_operand.hbm [shape: f32[16,1024], index: 8, kind: output, shape index: {0}]   ;;  %s2585_s9 = inlined_call_operand.hbm [shape: f32[16,384], index: 9, kind: output, shape index: {1}]  }
   0x1   :  { %16 = vsyncpa [#allocation6], 0 }
   0x2   :  { %17 = vsyncpa [#allocation9], 0 }
   0x3   :  { %18 = vsyncpa [#allocation4], 0 }
   0x4   :  { %19 = vsyncpa [#allocation13], 0  ;;  %s2343_s30 = smov [#allocation5]   ;;  %s2179_s13 = scalar_lea.hbm %s2577_s1, 8192 }
   0x5   :  { %s37_s10 = sshll.u32 %s2343_s30, 4  ;;  %p2180_p0 = scmp.ne.s32.totalorder %s2577_s1, %s2179_s13  ;;  %s38_s10 = int_to_ptr.vmem [resolvable:$true] %s37_s10 }
   0x6   :  { %p2183_p1 = scmp.lt.u32.totalorder %s2179_s13, %s2577_s1 }
   0x8   :  { %p2185_p2 = pnand %p2183_p1, %p2180_p0 }
   0xa   :  { %2188 = shalt.err (!%p2185_p2)
}
   0xb   :  { %s2189_s18 = scalar_lea.vmem %s38_s10, 8192  ;;  %p2194_p4 = scmp.lt.s32.totalorder %s38_s10, %s38_s10 }
   0xc   :  { %p2190_p3 = scmp.ne.s32.totalorder %s38_s10, %s2189_s18  ;;  %p2195_p5 = scmp.lt.s32.totalorder %s2189_s18, %s2189_s18 }
   0xe   :  { %p2196_p6 = por %p2195_p5, %p2194_p4 }
  0x10   :  { %p2197_p7 = pnand %p2196_p6, %p2190_p3 }
  0x12   :  { %2200 = shalt.err (!%p2197_p7)
}
  0x13   :  { %s2344_s19 = smov 64   ;;  %s2345_s20 = smov 4  }
  0x14   :  { %43 = dma.hbm_to_vmem [thread:$0]  %s2577_s1, 8192, %s38_s10, [#allocation6], %s2344_s19, %s2344_s19, %s2345_s20  }
  0x15   :  { %s2346_s23 = smov [#allocation8]   ;;  %s2201_s27 = scalar_lea.hbm %s2579_s3, 2048 }
  0x16   :  { %s59_s24 = sshll.u32 %s2346_s23, 4  ;;  %p2202_p8 = scmp.ne.s32.totalorder %s2579_s3, %s2201_s27  ;;  %s60_s24 = int_to_ptr.vmem [resolvable:$true] %s59_s24 }
  0x17   :  { %p2205_p9 = scmp.lt.u32.totalorder %s2201_s27, %s2579_s3 }
  0x19   :  { %p2207_p10 = pnand %p2205_p9, %p2202_p8 }
  0x1b   :  { %2210 = shalt.err (!%p2207_p10)
}
  0x1c   :  { %s2211_s12 = scalar_lea.vmem %s60_s24, 2048  ;;  %p2216_p12 = scmp.lt.s32.totalorder %s60_s24, %s60_s24 }
  0x1d   :  { %p2212_p11 = scmp.ne.s32.totalorder %s60_s24, %s2211_s12  ;;  %p2217_p13 = scmp.lt.s32.totalorder %s2211_s12, %s2211_s12 }
  0x1f   :  { %p2218_p0 = por %p2217_p13, %p2216_p12 }
  0x21   :  { %p2219_p1 = pnand %p2218_p0, %p2212_p11 }
  0x23   :  { %2222 = shalt.err (!%p2219_p1)
}
  0x24   :  { %s2347_s1 = smov 128   ;;  %s2348_s10 = smov 8  }
  0x25   :  { %65 = dma.hbm_to_vmem [thread:$0]  %s2579_s3, 2048, %s60_s24, [#allocation9], %s2347_s1, %s2347_s1, %s2348_s10  }
  0x26   :  { %s2349_s15 = smov [#allocation2]   ;;  %s2223_s20 = scalar_lea.hbm %s2576_s0, 1024 }
  0x27   :  { %s25_s16 = sshll.u32 %s2349_s15, 4  ;;  %p2224_p2 = scmp.ne.s32.totalorder %s2576_s0, %s2223_s20  ;;  %s26_s16 = int_to_ptr.vmem [resolvable:$true] %s25_s16 }
  0x28   :  { %p2227_p3 = scmp.lt.u32.totalorder %s2223_s20, %s2576_s0 }
  0x2a   :  { %p2229_p4 = pnand %p2227_p3, %p2224_p2 }
  0x2c   :  { %2232 = shalt.err (!%p2229_p4)
}
  0x2d   :  { %s2233_s26 = scalar_lea.vmem %s26_s16, 1024  ;;  %p2238_p6 = scmp.lt.s32.totalorder %s26_s16, %s26_s16 }
  0x2e   :  { %p2234_p5 = scmp.ne.s32.totalorder %s26_s16, %s2233_s26  ;;  %p2239_p7 = scmp.lt.s32.totalorder %s2233_s26, %s2233_s26 }
  0x30   :  { %p2240_p8 = por %p2239_p7, %p2238_p6 }
  0x32   :  { %p2241_p9 = pnand %p2240_p8, %p2234_p5 }
  0x34   :  { %2244 = shalt.err (!%p2241_p9)
}
  0x35   :  { %s2350_s3 = smov 512   ;;  %s2351_s24 = smov 32  }
  0x36   :  { %31 = dma.hbm_to_vmem [thread:$0]  %s2576_s0, 1024, %s26_s16, [#allocation3], %s2350_s3, %s2350_s3, %s2351_s24  }
  0x37   :  { %s2352_s29 = smov [#allocation7]   ;;  %s2353_s11 = smov [#allocation10]  }
  0x38   :  { %s50_s30 = sshll.u32 %s2352_s29, 4  ;;  %s75_s12 = sshll.u32 %s2353_s11, 4  ;;  %s51_s30 = int_to_ptr.vmem [resolvable:$true] %s50_s30  ;;  %s76_s12 = int_to_ptr.vmem [resolvable:$true] %s75_s12 }
  0x39   :  { %s2245_s13 = scalar_lea.hbm %s2578_s2, 16 }
  0x3a   :  { %p2246_p10 = scmp.ne.s32.totalorder %s2578_s2, %s2245_s13  ;;  %p2249_p11 = scmp.lt.u32.totalorder %s2245_s13, %s2578_s2 }
  0x3c   :  { %p2251_p12 = pnand %p2249_p11, %p2246_p10 }
  0x3e   :  { %2254 = shalt.err (!%p2251_p12)
}
  0x3f   :  { %s2255_s0 = scalar_lea.vmem %s51_s30, 16  ;;  %s2259_s16 = scalar_lea.vmem %s51_s30, 32 }
  0x40   :  { %p2256_p13 = scmp.ne.s32.totalorder %s51_s30, %s2255_s0  ;;  %p2260_p0 = scmp.lt.s32.totalorder %s51_s30, %s51_s30 }
  0x41   :  { %p2261_p1 = scmp.lt.s32.totalorder %s2259_s16, %s2255_s0 }
  0x43   :  { %p2262_p2 = por %p2261_p1, %p2260_p0 }
  0x45   :  { %p2263_p3 = pnand %p2262_p2, %p2256_p13 }
  0x47   :  { %2266 = shalt.err (!%p2263_p3)
}
  0x48   :  { %53 = dma.hbm_to_vmem [thread:$0]  %s2578_s2, 16, %s51_s30, [#allocation6]  }
  0x49   :  { %s2267_s25 = scalar_lea.hbm %s2582_s6, 8192 }
  0x4a   :  { %p2268_p4 = scmp.ne.s32.totalorder %s2582_s6, %s2267_s25  ;;  %p2271_p5 = scmp.lt.u32.totalorder %s2267_s25, %s2582_s6 }
  0x4c   :  { %p2273_p6 = pnand %p2271_p5, %p2268_p4 }
  0x4e   :  { %2276 = shalt.err (!%p2273_p6)
}
  0x4f   :  { %s2277_s11 = scalar_lea.vmem %s76_s12, 8192  ;;  %p2282_p8 = scmp.lt.s32.totalorder %s76_s12, %s76_s12 }
  0x50   :  { %p2278_p7 = scmp.ne.s32.totalorder %s76_s12, %s2277_s11  ;;  %p2283_p9 = scmp.lt.s32.totalorder %s2277_s11, %s2277_s11 }
  0x52   :  { %p2284_p10 = por %p2283_p9, %p2282_p8 }
  0x54   :  { %p2285_p11 = pnand %p2284_p10, %p2278_p7 }
  0x56   :  { %2288 = shalt.err (!%p2285_p11)
}
  0x57   :  { %81 = dma.hbm_to_vmem [thread:$0]  %s2582_s6, 8192, %s76_s12, [#allocation9], %s2350_s3, %s2350_s3, %s2351_s24  }
  0x58   :  { %2333 = dma.done.wait [#allocation3], 1024  }
  0x59   :  { %2334 = vsyncadd [#allocation3], 4294966272 }
  0x5a   :  { %2335 = dma.done.wait [#allocation6], 8208  }
  0x5b   :  { %2336 = vsyncadd [#allocation6], 4294959088 }
  0x5c   :  { %2337 = dma.done.wait [#allocation9], 10240  }
  0x5d   :  { %2338 = vsyncadd [#allocation9], 4294957056  ;;  %v2023_v0 = vld [vmem:[#allocation5 + $0x40] sm:$0xff]   ;;  %v2027_v4 = vld [vmem:[#allocation5 + $0x48] sm:$0xff]  }
  0x5e   :  { %v2024_v1 = vld [vmem:[#allocation5 + $0xc0] sm:$0xff]   ;;  %1918 = vmatprep.subr.bf16.mxu0 %v2023_v0  ;;  %v2028_v5 = vld [vmem:[#allocation5 + $0xc8] sm:$0xff]   ;;  %v2031_v8 = vld [vmem:[#allocation5 + $0x50] sm:$0xff]  }
  0x5f   :  { %v2025_v2 = vld [vmem:[#allocation5] sm:$0xff]   ;;  %1940 = vmatprep.subr.bf16.mxu1 %v2024_v1  ;;  %v2029_v6 = vld [vmem:[#allocation5 + $0x8] sm:$0xff]   ;;  %v2032_v9 = vld [vmem:[#allocation5 + $0xd0] sm:$0xff]  }
  0x60   :  { %v2026_v3 = vld [vmem:[#allocation5 + $0x80] sm:$0xff]   ;;  %1919 = vmatpush3.bf16.msra.mxu0 %v2025_v2  ;;  %v2030_v7 = vld [vmem:[#allocation5 + $0x88] sm:$0xff]   ;;  %v2033_v10 = vld [vmem:[#allocation5 + $0x10] sm:$0xff]  }
  0x61   :  { %1941 = vmatpush3.bf16.msra.mxu1 %v2026_v3  ;;  %1920 = vmatprep.subr.bf16.mxu0 %v2027_v4  ;;  %v2034_v11 = vld [vmem:[#allocation5 + $0x90] sm:$0xff]   ;;  %v2035_v12 = vld [vmem:[#allocation5 + $0x58] sm:$0xff]   ;;  %v2039_v16 = vld [vmem:[#allocation5 + $0x60] sm:$0xff]  }
  0x62   :  { %1942 = vmatprep.subr.bf16.mxu1 %v2028_v5  ;;  %v2036_v13 = vld [vmem:[#allocation5 + $0xd8] sm:$0xff]   ;;  %v2040_v17 = vld [vmem:[#allocation5 + $0xe0] sm:$0xff]   ;;  %v2043_v20 = vld [vmem:[#allocation5 + $0x68] sm:$0xff]  }
  0x63   :  { %v2037_v14 = vld [vmem:[#allocation5 + $0x18] sm:$0xff]   ;;  %v2041_v18 = vld [vmem:[#allocation5 + $0x20] sm:$0xff]   ;;  %v2044_v21 = vld [vmem:[#allocation5 + $0xe8] sm:$0xff]  }
  0x64   :  { %1921 = vmatpush3.bf16.msra.mxu0 %v2029_v6  ;;  %v2038_v15 = vld [vmem:[#allocation5 + $0x98] sm:$0xff]   ;;  %v2042_v19 = vld [vmem:[#allocation5 + $0xa0] sm:$0xff]   ;;  %v2045_v22 = vld [vmem:[#allocation5 + $0x28] sm:$0xff]  }
  0x65   :  { %1943 = vmatpush3.bf16.msra.mxu1 %v2030_v7  ;;  %1922 = vmatprep.subr.bf16.mxu0 %v2031_v8  ;;  %v2046_v23 = vld [vmem:[#allocation5 + $0xa8] sm:$0xff]   ;;  %v2047_v24 = vld [vmem:[#allocation5 + $0x70] sm:$0xff]   ;;  %v2051_v28 = vld [vmem:[#allocation5 + $0x78] sm:$0xff]  }
  0x66   :  { %1944 = vmatprep.subr.bf16.mxu1 %v2032_v9  ;;  %v2048_v25 = vld [vmem:[#allocation5 + $0xf0] sm:$0xff]   ;;  %v2052_v29 = vld [vmem:[#allocation5 + $0xf8] sm:$0xff]   ;;  %v100_v32 = vld [vmem:[#allocation2] sm:$0xff] }
  0x67   :  { %v2049_v26 = vld [vmem:[#allocation5 + $0x30] sm:$0xff]   ;;  %v2053_v30 = vld [vmem:[#allocation5 + $0x38] sm:$0xff]   ;;  %v104_v33 = vld [vmem:[#allocation2 + $0x20] sm:$0xff] }
  0x68   :  { %1923 = vmatpush3.bf16.msra.mxu0 %v2033_v10  ;;  %v2050_v27 = vld [vmem:[#allocation5 + $0xb0] sm:$0xff]   ;;  %v2054_v31 = vld [vmem:[#allocation5 + $0xb8] sm:$0xff]   ;;  %v101_v34 = vld [vmem:[#allocation2 + $0x8] sm:$0xff]  ;;  %v1750_v35 = vcombine.low %v100_v32, %v104_v33  ;;  %v1751_v36 = vcombine.high %v100_v32, %v104_v33  ;;  %v2354_v32 = vmov 0  }
  0x69   :  { %1945 = vmatpush3.bf16.msra.mxu1 %v2034_v11  ;;  %1924 = vmatprep.subr.bf16.mxu0 %v2035_v12  ;;  %v105_v37 = vld [vmem:[#allocation2 + $0x28] sm:$0xff]  ;;  %v2055_v40 = vld [vmem:[#allocation5 + $0x140] sm:$0xff]   ;;  %v2063_v48 = vld [vmem:[#allocation5 + $0x150] sm:$0xff]  }
  0x6a   :  { %1946 = vmatprep.subr.bf16.mxu1 %v2036_v13  ;;  %v1752_v38 = vcombine.low %v101_v34, %v105_v37  ;;  %v1753_v39 = vcombine.high %v101_v34, %v105_v37  ;;  %699 = vmatprep.mubr.bf16.mxu0 %v1751_v36  ;;  %v2056_v41 = vld [vmem:[#allocation5 + $0x1c0] sm:$0xff]   ;;  %v2059_v44 = vld [vmem:[#allocation5 + $0x148] sm:$0xff]   ;;  %v2064_v49 = vld [vmem:[#allocation5 + $0x1d0] sm:$0xff]  }
  0x6b   :  { %v2057_v42 = vld [vmem:[#allocation5 + $0x100] sm:$0xff]   ;;  %v2060_v45 = vld [vmem:[#allocation5 + $0x1c8] sm:$0xff]   ;;  %v2065_v50 = vld [vmem:[#allocation5 + $0x110] sm:$0xff]  }
  0x6c   :  { %1925 = vmatpush3.bf16.msra.mxu0 %v2037_v14  ;;  %740 = vmatprep.mubr.bf16.mxu1 %v1753_v39  ;;  %v2058_v43 = vld [vmem:[#allocation5 + $0x180] sm:$0xff]   ;;  %v2061_v46 = vld [vmem:[#allocation5 + $0x108] sm:$0xff]   ;;  %v2066_v51 = vld [vmem:[#allocation5 + $0x190] sm:$0xff]  }
  0x6d   :  { %1947 = vmatpush3.bf16.msra.mxu1 %v2038_v15  ;;  %1926 = vmatprep.subr.bf16.mxu0 %v2039_v16  ;;  %v2062_v47 = vld [vmem:[#allocation5 + $0x188] sm:$0xff]   ;;  %v2067_v52 = vld [vmem:[#allocation5 + $0x158] sm:$0xff]   ;;  %v2071_v56 = vld [vmem:[#allocation5 + $0x160] sm:$0xff]  }
  0x6e   :  { %1948 = vmatprep.subr.bf16.mxu1 %v2040_v17  ;;  %v2068_v53 = vld [vmem:[#allocation5 + $0x1d8] sm:$0xff]   ;;  %v2072_v57 = vld [vmem:[#allocation5 + $0x1e0] sm:$0xff]   ;;  %v2075_v60 = vld [vmem:[#allocation5 + $0x168] sm:$0xff]  }
  0x6f   :  { %v2069_v54 = vld [vmem:[#allocation5 + $0x118] sm:$0xff]   ;;  %v2073_v58 = vld [vmem:[#allocation5 + $0x120] sm:$0xff]   ;;  %v2076_v61 = vld [vmem:[#allocation5 + $0x1e8] sm:$0xff]  }
  0x70   :  { %1927 = vmatpush3.bf16.msra.mxu0 %v2041_v18  ;;  %v2070_v55 = vld [vmem:[#allocation5 + $0x198] sm:$0xff]   ;;  %v2074_v59 = vld [vmem:[#allocation5 + $0x1a0] sm:$0xff]   ;;  %v2077_v62 = vld [vmem:[#allocation5 + $0x128] sm:$0xff]  }
  0x71   :  { %1949 = vmatpush3.bf16.msra.mxu1 %v2042_v19  ;;  %1928 = vmatprep.subr.bf16.mxu0 %v2043_v20  ;;  %v2078_v63 = vld [vmem:[#allocation5 + $0x1a8] sm:$0xff]   ;;  %v2079_v0 = vld [vmem:[#allocation5 + $0x170] sm:$0xff]   ;;  %v2083_v4 = vld [vmem:[#allocation5 + $0x178] sm:$0xff]  }
  0x72   :  { %1950 = vmatprep.subr.bf16.mxu1 %v2044_v21  ;;  %v2080_v1 = vld [vmem:[#allocation5 + $0x1f0] sm:$0xff]   ;;  %v2084_v5 = vld [vmem:[#allocation5 + $0x1f8] sm:$0xff]   ;;  %v2087_v16 = vld [vmem:[#allocation8] ss:$8 sps:$4 sm:$0xff]  }
  0x73   :  { %v2081_v2 = vld [vmem:[#allocation5 + $0x130] sm:$0xff]   ;;  %v2085_v6 = vld [vmem:[#allocation5 + $0x138] sm:$0xff]   ;;  %v2093_v21 = vld [vmem:[#allocation8 + $0x20] ss:$8 sps:$4 sm:$0xff]  }
  0x74   :  { %1929 = vmatpush3.bf16.msra.mxu0 %v2045_v22  ;;  %v2082_v3 = vld [vmem:[#allocation5 + $0x1b0] sm:$0xff]   ;;  %v2086_v7 = vld [vmem:[#allocation5 + $0x1b8] sm:$0xff]   ;;  %v998_v33 = vld [vmem:[#allocation10] sm:$0xff] }
  0x75   :  { %1951 = vmatpush3.bf16.msra.mxu1 %v2046_v23  ;;  %1930 = vmatprep.subr.bf16.mxu0 %v2047_v24  ;;  %v102_v8 = vld [vmem:[#allocation2 + $0x10] sm:$0xff]  ;;  %v103_v12 = vld [vmem:[#allocation2 + $0x18] sm:$0xff]  ;;  %v1002_v34 = vld [vmem:[#allocation10 + $0x20] sm:$0xff] }
  0x76   :  { %1952 = vmatprep.subr.bf16.mxu1 %v2048_v25  ;;  %v106_v9 = vld [vmem:[#allocation2 + $0x30] sm:$0xff]  ;;  %v107_v13 = vld [vmem:[#allocation2 + $0x38] sm:$0xff]  ;;  %v2099_v25 = vld [vmem:[#allocation8 + $0x40] ss:$8 sps:$4 sm:$0xff]   ;;  %v1838_v36 = vcombine.low %v998_v33, %v1002_v34  ;;  %v1839_v37 = vcombine.high %v998_v33, %v1002_v34 }
  0x77   :  { %v1754_v10 = vcombine.low %v102_v8, %v106_v9  ;;  %v1755_v11 = vcombine.high %v102_v8, %v106_v9  ;;  %v1756_v14 = vcombine.low %v103_v12, %v107_v13  ;;  %v1757_v15 = vcombine.high %v103_v12, %v107_v13  ;;  %v2089_v17 = vld [vmem:[#allocation8 + $0x4] ss:$8 sps:$4 sm:$0xff]   ;;  %v2092_v18 = vld [vmem:[#allocation8 + $0x14] ss:$8 sps:$4 sm:$0xff]   ;;  %v2090_v19 = vld [vmem:[#allocation8 + $0x10] ss:$8 sps:$4 sm:$0xff]  }
  0x78   :  { %1931 = vmatpush3.bf16.msra.mxu0 %v2049_v26  ;;  %v2095_v20 = vld [vmem:[#allocation8 + $0x24] ss:$8 sps:$4 sm:$0xff]   ;;  %v2098_v22 = vld [vmem:[#allocation8 + $0x34] ss:$8 sps:$4 sm:$0xff]   ;;  %v2096_v23 = vld [vmem:[#allocation8 + $0x30] ss:$8 sps:$4 sm:$0xff]  }
  0x79   :  { %1953 = vmatpush3.bf16.msra.mxu1 %v2050_v27  ;;  %1932 = vmatprep.subr.bf16.mxu0 %v2051_v28  ;;  %v2101_v24 = vld [vmem:[#allocation8 + $0x44] ss:$8 sps:$4 sm:$0xff]   ;;  %v2104_v26 = vld [vmem:[#allocation8 + $0x54] ss:$8 sps:$4 sm:$0xff]   ;;  %v2102_v27 = vld [vmem:[#allocation8 + $0x50] ss:$8 sps:$4 sm:$0xff]  }
  0x7a   :  { %1954 = vmatprep.subr.bf16.mxu1 %v2052_v29  ;;  %v2107_v28 = vld [vmem:[#allocation8 + $0x64] ss:$8 sps:$4 sm:$0xff]   ;;  %v2105_v29 = vld [vmem:[#allocation8 + $0x60] ss:$8 sps:$4 sm:$0xff]  }
  0x7b   :  { %v1006_v39 = vld [vmem:[#allocation10 + $0x40] sm:$0xff]  ;;  %v1027_v34 = vld [vmem:[#allocation10 + $0xe8] sm:$0xff] }
  0x7c   :  { %1933 = vmatpush3.bf16.msra.mxu0 %v2053_v30  ;;  %v2110_v30 = vld [vmem:[#allocation8 + $0x74] ss:$8 sps:$4 sm:$0xff]  }
  0x7d   :  { %1955 = vmatpush3.bf16.msra.mxu1 %v2054_v31  ;;  %1962 = vmatprep.subr.bf16.mxu0 %v2055_v40  ;;  %v2108_v31 = vld [vmem:[#allocation8 + $0x70] ss:$8 sps:$4 sm:$0xff]   ;;  %v1010_v40 = vld [vmem:[#allocation10 + $0x60] sm:$0xff] }
  0x7e   :  { %1984 = vmatprep.subr.bf16.mxu1 %v2056_v41 }
  0x7f   :  { %700 = vmatmul.mubr.bf16.vlgmr.msra.gmra.mrb[0].mxu0 %v1750_v35  ;;  %v999_v35 = vld [vmem:[#allocation10 + $0x8] sm:$0xff] }
  0x80   :  { %741 = vmatmul.mubr.bf16.vlgmr.msra.gmra.mrb[0].mxu1 %v1752_v38  ;;  %1963 = vmatpush3.bf16.msra.mxu0 %v2057_v42  ;;  %v1003_v38 = vld [vmem:[#allocation10 + $0x28] sm:$0xff] }
  0x81   :  { %1985 = vmatpush3.bf16.msra.mxu1 %v2058_v43  ;;  %1964 = vmatprep.subr.bf16.mxu0 %v2059_v44  ;;  %v1840_v41 = vcombine.low %v999_v35, %v1003_v38  ;;  %v1841_v42 = vcombine.high %v999_v35, %v1003_v38  ;;  %v1847_v43 = vcombine.high %v1006_v39, %v1010_v40  ;;  %v1030_v38 = vld [vmem:[#allocation10 + $0x100] sm:$0xff] }
  0x82   :  { %1986 = vmatprep.subr.bf16.mxu1 %v2060_v45  ;;  %781 = vmatprep.mubr.bf16.mxu0 %v1755_v11  ;;  %v1846_v44 = vcombine.low %v1006_v39, %v1010_v40  ;;  %v1034_v39 = vld [vmem:[#allocation10 + $0x120] sm:$0xff]  ;;  %v1031_v40 = vld [vmem:[#allocation10 + $0x108] sm:$0xff] }
  0x83   :  { %822 = vmatprep.mubr.bf16.mxu1 %v1757_v15  ;;  %v1011_v15 = vld [vmem:[#allocation10 + $0x68] sm:$0xff] }
  0x84   :  { %1965 = vmatpush3.bf16.msra.mxu0 %v2061_v46 }
  0x85   :  { %1987 = vmatpush3.bf16.msra.mxu1 %v2062_v47  ;;  %1966 = vmatprep.subr.bf16.mxu0 %v2063_v48  ;;  %v1749_v47 = vld [vmem:[#allocation7] ss:$0 sm:$0xff] }
  0x86   :  { %1988 = vmatprep.subr.bf16.mxu1 %v2064_v49 }
  0x88   :  { %1967 = vmatpush3.bf16.msra.mxu0 %v2065_v50 }
  0x89   :  { %1989 = vmatpush3.bf16.msra.mxu1 %v2066_v51  ;;  %1968 = vmatprep.subr.bf16.mxu0 %v2067_v52 }
  0x8a   :  { %1990 = vmatprep.subr.bf16.mxu1 %v2068_v53 }
  0x8c   :  { %1969 = vmatpush3.bf16.msra.mxu0 %v2069_v54 }
  0x8d   :  { %1991 = vmatpush3.bf16.msra.mxu1 %v2070_v55  ;;  %1970 = vmatprep.subr.bf16.mxu0 %v2071_v56 }
  0x8e   :  { %1992 = vmatprep.subr.bf16.mxu1 %v2072_v57 }
  0x90   :  { %1971 = vmatpush3.bf16.msra.mxu0 %v2073_v58 }
  0x91   :  { %1993 = vmatpush3.bf16.msra.mxu1 %v2074_v59  ;;  %1972 = vmatprep.subr.bf16.mxu0 %v2075_v60 }
  0x92   :  { %1994 = vmatprep.subr.bf16.mxu1 %v2076_v61 }
  0x94   :  { %1973 = vmatpush3.bf16.msra.mxu0 %v2077_v62 }
  0x95   :  { %1995 = vmatpush3.bf16.msra.mxu1 %v2078_v63  ;;  %1974 = vmatprep.subr.bf16.mxu0 %v2079_v0 }
  0x96   :  { %1996 = vmatprep.subr.bf16.mxu1 %v2080_v1 }
  0x98   :  { %1975 = vmatpush3.bf16.msra.mxu0 %v2081_v2 }
  0x99   :  { %1997 = vmatpush3.bf16.msra.mxu1 %v2082_v3  ;;  %1976 = vmatprep.subr.bf16.mxu0 %v2083_v4 }
  0x9a   :  { %1998 = vmatprep.subr.bf16.mxu1 %v2084_v5 }
  0x9c   :  { %1977 = vmatpush3.bf16.msra.mxu0 %v2085_v6 }
  0x9d   :  { %1999 = vmatpush3.bf16.msra.mxu1 %v2086_v7  ;;  %942 = vmatprep.subr.bf16.mxu0 %v2089_v17 }
  0x9e   :  { %1424 = vmatprep.subr.bf16.mxu1 %v1839_v37 }
  0x9f   :  { %782 = vmatmul.mubr.bf16.vlgmr.msra.gmra.mrb[4].mxu0 %v1754_v10 }
  0xa0   :  { %823 = vmatmul.mubr.bf16.vlgmr.msra.gmra.mrb[4].mxu1 %v1756_v14  ;;  %943 = vmatpush1.bf16.msra.mxu0 %v2087_v16  ;;  %v1007_v14 = vld [vmem:[#allocation10 + $0x48] sm:$0xff] }
  0xa1   :  { %944 = vmatprep.subr.bf16.mxu0 %v2092_v18  ;;  %974 = vmatprep.mubr.bf16.mxu0 %v2354_v32 }
  0xa2   :  { %1456 = vmatprep.mubr.bf16.mxu1 %v2354_v32  ;;  %1425 = vmatpush1.bf16.msra.mxu1 %v1838_v36 }
  0xa3   :  { %1426 = vmatprep.subr.bf16.mxu1 %v1847_v43  ;;  %v1870_v43 = vcombine.low %v1030_v38, %v1034_v39 }
  0xa4   :  { %945 = vmatpush1.bf16.msra.mxu0 %v2090_v19  ;;  %v1849_v19 = vcombine.high %v1007_v14, %v1011_v15 }
  0xa5   :  { %946 = vmatprep.subr.bf16.mxu0 %v2095_v20  ;;  %v1848_v20 = vcombine.low %v1007_v14, %v1011_v15  ;;  %v852_v14 = vlaneseq }
  0xa6   :  { %1427 = vmatpush1.bf16.msra.mxu1 %v1846_v44 }
  0xa7   :  { %v2497_v15 = vshrl.u32 %v852_v14, 7 }
  0xa8   :  { %947 = vmatpush1.bf16.msra.mxu0 %v2093_v21  ;;  %v1014_v21 = vld [vmem:[#allocation10 + $0x80] sm:$0xff] }
  0xa9   :  { %948 = vmatprep.subr.bf16.mxu0 %v2098_v22  ;;  %v1018_v22 = vld [vmem:[#allocation10 + $0xa0] sm:$0xff] }
  0xac   :  { %949 = vmatpush1.bf16.msra.mxu0 %v2096_v23  ;;  %v1015_v23 = vld [vmem:[#allocation10 + $0x88] sm:$0xff] }
  0xad   :  { %950 = vmatprep.subr.bf16.mxu0 %v2101_v24  ;;  %v1855_v24 = vcombine.high %v1014_v21, %v1018_v22 }
  0xaf   :  { %1428 = vmatprep.subr.bf16.mxu1 %v1855_v24 }
  0xb0   :  { %951 = vmatpush1.bf16.msra.mxu0 %v2099_v25  ;;  %v1019_v25 = vld [vmem:[#allocation10 + $0xa8] sm:$0xff] }
  0xb1   :  { %952 = vmatprep.subr.bf16.mxu0 %v2104_v26  ;;  %v1854_v26 = vcombine.low %v1014_v21, %v1018_v22 }
  0xb3   :  { %1429 = vmatpush1.bf16.msra.mxu1 %v1854_v26 }
  0xb4   :  { %953 = vmatpush1.bf16.msra.mxu0 %v2102_v27  ;;  %v1856_v27 = vcombine.low %v1015_v23, %v1019_v25 }
  0xb5   :  { %954 = vmatprep.subr.bf16.mxu0 %v2107_v28  ;;  %v1857_v28 = vcombine.high %v1015_v23, %v1019_v25 }
  0xb8   :  { %955 = vmatpush1.bf16.msra.mxu0 %v2105_v29  ;;  %v1022_v29 = vld [vmem:[#allocation10 + $0xc0] sm:$0xff] }
  0xb9   :  { %956 = vmatprep.subr.bf16.mxu0 %v2110_v30  ;;  %v1026_v30 = vld [vmem:[#allocation10 + $0xe0] sm:$0xff] }
  0xba   :  { %v1863_v33 = vcombine.high %v1022_v29, %v1026_v30  ;;  %v1862_v35 = vcombine.low %v1022_v29, %v1026_v30 }
  0xbc   :  { %957 = vmatpush1.bf16.msra.mxu0 %v2108_v31  ;;  %v1023_v31 = vld [vmem:[#allocation10 + $0xc8] sm:$0xff]  ;;  %1430 = vmatprep.subr.bf16.mxu1 %v1863_v33 }
  0xbd   :  { %1467 = vmatprep.subr.bf16.mxu0 %v1841_v42  ;;  %v1864_v36 = vcombine.low %v1023_v31, %v1027_v34  ;;  %v1865_v37 = vcombine.high %v1023_v31, %v1027_v34  ;;  %1431 = vmatpush1.bf16.msra.mxu1 %v1862_v35  ;;  %v1035_v42 = vld [vmem:[#allocation10 + $0x128] sm:$0xff]  ;;  %v991_v34 = vld [vmem:[%s2581_s5] sm:$0xff] }
  0xbe   :  { %v1872_v44 = vcombine.low %v1031_v40, %v1035_v42 }
 0x152   :  { %v1934_v45 = vpop.f32.mrb[0].mxu0 }
 0x153   :  { %v1956_v46 = vpop.f32.mrb[0].mxu1  ;;  %v1935_v48 = vpop.f32.mrb[1].mxu0 }
 0x154   :  { %v1936_v49 = vadd.f32 %v1935_v48, %v1934_v45  ;;  %v1957_v50 = vpop.f32.mrb[1].mxu1  ;;  %v1937_v51 = vpop.f32.mrb[2].mxu0  ;;  %v1873_v45 = vcombine.high %v1031_v40, %v1035_v42  ;;  %v1039_v48 = vld [vmem:[#allocation10 + $0x148] sm:$0xff]  ;;  %v1012_v42 = vld [vmem:[#allocation10 + $0x70] sm:$0xff] }
 0x155   :  { %v1958_v52 = vadd.f32 %v1957_v50, %v1956_v46  ;;  %v1959_v53 = vpop.f32.mrb[2].mxu1  ;;  %v1938_v54 = vpop.f32.mrb[3].mxu0  ;;  %v1038_v46 = vld [vmem:[#allocation10 + $0x140] sm:$0xff]  ;;  %v1043_v50 = vld [vmem:[#allocation10 + $0x168] sm:$0xff] }
 0x156   :  { %v702_v55 = vadd.f32 %v1936_v49, %v1749_v47  ;;  %v1939_v56 = vadd.f32 %v1938_v54, %v1937_v51  ;;  %v1960_v57 = vpop.f32.mrb[3].mxu1  ;;  %v1046_v51 = vld [vmem:[#allocation10 + $0x180] sm:$0xff]  ;;  %v1881_v54 = vcombine.high %v1039_v48, %v1043_v50 }
 0x157   :  { %v1961_v58 = vadd.f32 %v1960_v57, %v1959_v53  ;;  %v1880_v57 = vcombine.low %v1039_v48, %v1043_v50  ;;  %v1020_v50 = vld [vmem:[#allocation10 + $0xb0] sm:$0xff] }
 0x158   :  { %v743_v59 = vadd.f32 %v1958_v52, %v702_v55  ;;  %v705_v60 = vadd.f32 %v1939_v56, %v1749_v47  ;;  %v1042_v47 = vld [vmem:[#allocation10 + $0x160] sm:$0xff]  ;;  %v1047_v55 = vld [vmem:[#allocation10 + $0x188] sm:$0xff] }
 0x159   :  { %v1879_v49 = vcombine.high %v1038_v46, %v1042_v47  ;;  %v1050_v52 = vld [vmem:[#allocation10 + $0x1a0] sm:$0xff]  ;;  %v1878_v53 = vcombine.low %v1038_v46, %v1042_v47  ;;  %v1051_v56 = vld [vmem:[#allocation10 + $0x1a8] sm:$0xff] }
 0x15a   :  { %v746_v61 = vadd.f32 %v1961_v58, %v705_v60  ;;  %v1887_v58 = vcombine.high %v1046_v51, %v1050_v52  ;;  %v1058_v60 = vld [vmem:[#allocation10 + $0x1e0] sm:$0xff] }
 0x172   :  { %v1978_v62 = vpop.f32.mrb[4].mxu0 }
 0x173   :  { %v2000_v63 = vpop.f32.mrb[4].mxu1  ;;  %v1979_v0 = vpop.f32.mrb[5].mxu0 }
 0x174   :  { %v1980_v1 = vadd.f32 %v1979_v0, %v1978_v62  ;;  %v2001_v2 = vpop.f32.mrb[5].mxu1  ;;  %v1981_v3 = vpop.f32.mrb[6].mxu0  ;;  %v2481_v62 = vld [vmem:[#allocation10 + $0x10] sm:$0xff]  ;;  %v2485_v0 = vld [vmem:[#allocation10 + $0x18] sm:$0xff] }
 0x175   :  { %v2002_v4 = vadd.f32 %v2001_v2, %v2000_v63  ;;  %v2003_v5 = vpop.f32.mrb[6].mxu1  ;;  %v1982_v6 = vpop.f32.mrb[7].mxu0  ;;  %v2483_v63 = vld [vmem:[#allocation10 + $0x30] sm:$0xff]  ;;  %v1059_v2 = vld [vmem:[#allocation10 + $0x1e8] sm:$0xff] }
 0x176   :  { %v784_v7 = vadd.f32 %v1980_v1, %v743_v59  ;;  %v1983_v8 = vadd.f32 %v1982_v6, %v1981_v3  ;;  %v2004_v9 = vpop.f32.mrb[7].mxu1  ;;  %v1054_v59 = vld [vmem:[#allocation10 + $0x1c0] sm:$0xff]  ;;  %v1055_v1 = vld [vmem:[#allocation10 + $0x1c8] sm:$0xff]  ;;  %v1842_v3 = vcombine.low %v2481_v62, %v2483_v63 }
 0x177   :  { %v2005_v10 = vadd.f32 %v2004_v9, %v2003_v5  ;;  %v1886_v5 = vcombine.low %v1046_v51, %v1050_v52  ;;  %v1897_v9 = vcombine.high %v1055_v1, %v1059_v2  ;;  %v1017_v51 = vld [vmem:[#allocation10 + $0x98] sm:$0xff] }
 0x178   :  { %v825_v11 = vadd.f32 %v2002_v4, %v784_v7  ;;  %v787_v12 = vadd.f32 %v1983_v8, %v746_v61  ;;  %v1889_v61 = vcombine.high %v1047_v55, %v1051_v56  ;;  %v2489_v4 = vld [vmem:[#allocation10 + $0x38] sm:$0xff]  ;;  %v1888_v7 = vcombine.low %v1047_v55, %v1051_v56 }
 0x179   :  { %v1844_v6 = vcombine.low %v2485_v0, %v2489_v4  ;;  %v1895_v8 = vcombine.high %v1054_v59, %v1058_v60  ;;  %v1021_v52 = vld [vmem:[#allocation10 + $0xb8] sm:$0xff] }
 0x17a   :  { %v828_v13 = vadd.f32 %v2005_v10, %v787_v12  ;;  %v831_v16 = vmax.f32 %v825_v11, 0.0  ;;  %v1894_v10 = vcombine.low %v1054_v59, %v1058_v60  ;;  %v1896_v11 = vcombine.low %v1055_v1, %v1059_v2  ;;  %v1025_v59 = vld [vmem:[#allocation10 + $0xd8] sm:$0xff]  ;;  %v1032_v1 = vld [vmem:[#allocation10 + $0x110] sm:$0xff] }
 0x17b   :  { %v1843_v12 = vcombine.high %v2481_v62, %v2483_v63  ;;  %v1861_v56 = vcombine.high %v1017_v51, %v1021_v52  ;;  %v1029_v60 = vld [vmem:[#allocation10 + $0xf8] sm:$0xff]  ;;  %v1860_v62 = vcombine.low %v1017_v51, %v1021_v52  ;;  %v1036_v2 = vld [vmem:[#allocation10 + $0x130] sm:$0xff] }
 0x17c   :  { %v832_v17 = vmax.f32 %v828_v13, 0.0  ;;  %v1845_v13 = vcombine.high %v2485_v0, %v2489_v4  ;;  %v1869_v0 = vcombine.high %v1025_v59, %v1029_v60  ;;  %v1037_v4 = vld [vmem:[#allocation10 + $0x138] sm:$0xff] }
 0x17e   :  { %v833_v18 = vpack.c.bf16 %v832_v17, %v831_v16  ;;  %v854_v16 = vsub.s32 0, %v2497_v15  ;;  %v850_v17 = vld [vmem:[%s2580_s4] sm:$0x3] }
 0x180   :  { %975 = vmatmul.mubr.bf16.vlgmr.msra.gmra.mrb[8].mxu0 %v833_v18  ;;  %v858_v18 = vsub.s32 1, %v2497_v15 }
 0x181   :  { %1468 = vmatpush1.bf16.msra.mxu0 %v1840_v41  ;;  %1499 = vmatprep.mubr.bf16.mxu0 %v2354_v32  ;;  %v1871_v41 = vcombine.high %v1030_v38, %v1034_v39 }
 0x182   :  { %1469 = vmatprep.subr.bf16.mxu0 %v1849_v19  ;;  %v855_v19 = vrot.slane %v850_v17, %v854_v16 }
 0x183   :  { %1432 = vmatprep.subr.bf16.mxu1 %v1871_v41  ;;  %v1008_v41 = vld [vmem:[#allocation10 + $0x50] sm:$0xff] }
 0x184   :  { %1433 = vmatpush1.bf16.msra.mxu1 %v1870_v43  ;;  %v1009_v43 = vld [vmem:[#allocation10 + $0x58] sm:$0xff]  ;;  %v1851_v47 = vcombine.high %v1008_v41, %v1012_v42 }
 0x185   :  { %1470 = vmatpush1.bf16.msra.mxu0 %v1848_v20  ;;  %1434 = vmatprep.subr.bf16.mxu1 %v1879_v49  ;;  %v859_v20 = vrot.slane %v850_v17, %v858_v18  ;;  %v1016_v49 = vld [vmem:[#allocation10 + $0x90] sm:$0xff] }
 0x186   :  { %1471 = vmatprep.subr.bf16.mxu0 %v1857_v28  ;;  %v1859_v55 = vcombine.high %v1016_v49, %v1020_v50 }
 0x188   :  { %1435 = vmatpush1.bf16.msra.mxu1 %v1878_v53  ;;  %v1850_v53 = vcombine.low %v1008_v41, %v1012_v42 }
 0x189   :  { %1472 = vmatpush1.bf16.msra.mxu0 %v1856_v27  ;;  %1436 = vmatprep.subr.bf16.mxu1 %v1887_v58  ;;  %v1028_v58 = vld [vmem:[#allocation10 + $0xf0] sm:$0xff] }
 0x18a   :  { %1473 = vmatprep.subr.bf16.mxu0 %v1865_v37 }
 0x18c   :  { %1437 = vmatpush1.bf16.msra.mxu1 %v1886_v5 }
 0x18d   :  { %1474 = vmatpush1.bf16.msra.mxu0 %v1864_v36  ;;  %1438 = vmatprep.subr.bf16.mxu1 %v1895_v8  ;;  %v992_v36 = vld [vmem:[%s2581_s5 + $0x8] sm:$0xff]  ;;  %v1040_v8 = vld [vmem:[#allocation10 + $0x150] sm:$0xff]  ;;  %s2355_s5 = smov [#allocation12]  }
 0x18e   :  { %1475 = vmatprep.subr.bf16.mxu0 %v1873_v45  ;;  %s1731_s10 = sshll.u32 %s2355_s5, 4  ;;  %s1732_s10 = int_to_ptr.vmem [resolvable:$true] %s1731_s10 }
 0x18f   :  { %s2289_s13 = scalar_lea.vmem %s1732_s10, 768  ;;  %p2294_p13 = scmp.lt.s32.totalorder %s1732_s10, %s1732_s10 }
 0x190   :  { %1439 = vmatpush1.bf16.msra.mxu1 %v1894_v10  ;;  %v1041_v10 = vld [vmem:[#allocation10 + $0x158] sm:$0xff]  ;;  %p2290_p12 = scmp.ne.s32.totalorder %s1732_s10, %s2289_s13  ;;  %p2295_p0 = scmp.lt.s32.totalorder %s2289_s13, %s2289_s13 }
 0x191   :  { %1476 = vmatpush1.bf16.msra.mxu0 %v1872_v44  ;;  %1510 = vmatprep.subr.bf16.mxu1 %v1843_v12  ;;  %v1013_v44 = vld [vmem:[#allocation10 + $0x78] sm:$0xff]  ;;  %v1874_v12 = vcombine.low %v1032_v1, %v1036_v2 }
 0x192   :  { %1477 = vmatprep.subr.bf16.mxu0 %v1881_v54  ;;  %v1853_v48 = vcombine.high %v1009_v43, %v1013_v44  ;;  %v1852_v54 = vcombine.low %v1009_v43, %v1013_v44  ;;  %p2296_p1 = por %p2295_p0, %p2294_p13 }
 0x194   :  { %p2297_p2 = pnand %p2296_p1, %p2290_p12 }
 0x195   :  { %1478 = vmatpush1.bf16.msra.mxu0 %v1880_v57  ;;  %v1024_v57 = vld [vmem:[#allocation10 + $0xd0] sm:$0xff] }
 0x196   :  { %1479 = vmatprep.subr.bf16.mxu0 %v1889_v61  ;;  %v1858_v61 = vcombine.low %v1016_v49, %v1020_v50  ;;  %v1867_v63 = vcombine.high %v1024_v57, %v1028_v58  ;;  %v1866_v5 = vcombine.low %v1024_v57, %v1028_v58 }
 0x199   :  { %1480 = vmatpush1.bf16.msra.mxu0 %v1888_v7  ;;  %v1875_v7 = vcombine.high %v1032_v1, %v1036_v2 }
 0x19a   :  { %1481 = vmatprep.subr.bf16.mxu0 %v1897_v9  ;;  %v1044_v9 = vld [vmem:[#allocation10 + $0x170] sm:$0xff] }
 0x19b   :  { %v1883_v14 = vcombine.high %v1040_v8, %v1044_v9 }
 0x19d   :  { %1482 = vmatpush1.bf16.msra.mxu0 %v1896_v11  ;;  %v1045_v11 = vld [vmem:[#allocation10 + $0x178] sm:$0xff] }
 0x19e   :  { %1553 = vmatprep.subr.bf16.mxu0 %v1845_v13  ;;  %v1885_v17 = vcombine.high %v1041_v10, %v1045_v11 }
 0x253   :  { %v976_v21 = vpop.f32.mrb[8].mxu0 }
 0x254   :  { %v977_v22 = vadd.f32 %v976_v21, %v855_v19  ;;  %v978_v23 = vpop.f32.mrb[9].mxu0  ;;  %v1049_v21 = vld [vmem:[#allocation10 + $0x198] sm:$0xff] }
 0x255   :  { %v979_v24 = vadd.f32 %v978_v23, %v859_v20  ;;  %v980_v25 = vpop.f32.mrb[10].mxu0  ;;  %v1882_v23 = vcombine.low %v1040_v8, %v1044_v9 }
 0x256   :  { %1709 = vst [vmem:[#allocation12 + $0x8] sm:$0xff] %v977_v22  ;;  %v981_v26 = vadd.f32 %v980_v25, %v855_v19  ;;  %v982_v27 = vpop.f32.mrb[11].mxu0  ;;  %v1048_v19 = vld [vmem:[#allocation10 + $0x190] sm:$0xff] }
 0x257   :  { %v985_v28 = vmul.f32 0.5, %v979_v24  ;;  %1710 = vst [vmem:[#allocation12 + $0x10] sm:$0xff] %v979_v24  ;;  %v983_v29 = vadd.f32 %v982_v27, %v859_v20  ;;  %v1052_v20 = vld [vmem:[#allocation10 + $0x1b0] sm:$0xff]  ;;  %v1884_v24 = vcombine.low %v1041_v10, %v1045_v11 }
 0x258   :  { %1712 = vst [vmem:[#allocation12 + $0x20] sm:$0xff] %v981_v26  ;;  %v1891_v25 = vcombine.high %v1048_v19, %v1052_v20  ;;  %v1056_v27 = vld [vmem:[#allocation10 + $0x1d0] sm:$0xff] }
 0x259   :  { %v987_v30 = vmul.f32 1.442695, %v985_v28  ;;  %v986_v31 = vmul.f32 0.5, %v983_v29  ;;  %1713 = vst [vmem:[#allocation12 + $0x28] sm:$0xff] %v983_v29  ;;  %v1060_v28 = vld [vmem:[#allocation10 + $0x1f0] sm:$0xff]  ;;  %v1057_v29 = vld [vmem:[#allocation10 + $0x1d8] sm:$0xff] }
 0x25b   :  { %2111 = vpow2.f32 %v987_v30  ;;  %v989_v33 = vmul.f32 1.442695, %v986_v31  ;;  %v1061_v30 = vld [vmem:[#allocation10 + $0x1f8] sm:$0xff]  ;;  %v1890_v31 = vcombine.low %v1048_v19, %v1052_v20 }
 0x25d   :  { %2113 = vpow2.f32 %v989_v33 }
 0x265   :  { %v2112_v35 = vpop.eup %2111 }
 0x266   :  { %v993_v37 = vmul.f32 %v2112_v35, %v991_v34  ;;  %v1899_v34 = vcombine.high %v1056_v27, %v1060_v28  ;;  %v1901_v35 = vcombine.high %v1057_v29, %v1061_v30 }
 0x267   :  { %v2114_v38 = vpop.eup %2113 }
 0x268   :  { %v994_v39 = vmul.f32 %v2114_v38, %v992_v36  ;;  %v995_v40 = vadd.f32 %v993_v37, %v977_v22  ;;  %v1053_v22 = vld [vmem:[#allocation10 + $0x1b8] sm:$0xff]  ;;  %v1898_v36 = vcombine.low %v1056_v27, %v1060_v28  ;;  %v1900_v37 = vcombine.low %v1057_v29, %v1061_v30 }
 0x269   :  { %v1892_v33 = vcombine.low %v1049_v21, %v1053_v22 }
 0x26a   :  { %v996_v45 = vadd.f32 %v994_v39, %v981_v26  ;;  %1708 = vst [vmem:[#allocation12] sm:$0xff] %v995_v40  ;;  %v1893_v26 = vcombine.high %v1049_v21, %v1053_v22 }
 0x26c   :  { %v2514_v46 = vpack.c.bf16 %v996_v45, %v995_v40  ;;  %1711 = vst [vmem:[#allocation12 + $0x18] sm:$0xff] %v996_v45 }
 0x26e   :  { %1457 = vmatmul.mubr.bf16.vlgmr.msra.gmra.mrb[8].mxu1 %v2514_v46  ;;  %1500 = vmatmul.mubr.bf16.vlgmr.msra.gmra.mrb[12].mxu0 %v2514_v46 }
 0x26f   :  { %1511 = vmatpush1.bf16.msra.mxu1 %v1842_v3  ;;  %1554 = vmatpush1.bf16.msra.mxu0 %v1844_v6  ;;  %v1033_v3 = vld [vmem:[#allocation10 + $0x118] sm:$0xff]  ;;  %v1868_v6 = vcombine.low %v1025_v59, %v1029_v60 }
 0x270   :  { %1512 = vmatprep.subr.bf16.mxu1 %v1851_v47  ;;  %1555 = vmatprep.subr.bf16.mxu0 %v1853_v48  ;;  %v1876_v13 = vcombine.low %v1033_v3, %v1037_v4 }
 0x271   :  { %1542 = vmatprep.mubr.bf16.mxu1 %v2354_v32  ;;  %1585 = vmatprep.mubr.bf16.mxu0 %v2354_v32  ;;  %v1877_v32 = vcombine.high %v1033_v3, %v1037_v4 }
 0x273   :  { %1513 = vmatpush1.bf16.msra.mxu1 %v1850_v53  ;;  %1556 = vmatpush1.bf16.msra.mxu0 %v1852_v54 }
 0x274   :  { %1514 = vmatprep.subr.bf16.mxu1 %v1859_v55  ;;  %1557 = vmatprep.subr.bf16.mxu0 %v1861_v56 }
 0x277   :  { %1515 = vmatpush1.bf16.msra.mxu1 %v1858_v61  ;;  %1558 = vmatpush1.bf16.msra.mxu0 %v1860_v62 }
 0x278   :  { %1516 = vmatprep.subr.bf16.mxu1 %v1867_v63  ;;  %1559 = vmatprep.subr.bf16.mxu0 %v1869_v0 }
 0x27b   :  { %1517 = vmatpush1.bf16.msra.mxu1 %v1866_v5  ;;  %1560 = vmatpush1.bf16.msra.mxu0 %v1868_v6 }
 0x27c   :  { %1518 = vmatprep.subr.bf16.mxu1 %v1875_v7  ;;  %1561 = vmatprep.subr.bf16.mxu0 %v1877_v32 }
 0x27f   :  { %1519 = vmatpush1.bf16.msra.mxu1 %v1874_v12  ;;  %1562 = vmatpush1.bf16.msra.mxu0 %v1876_v13 }
 0x280   :  { %1520 = vmatprep.subr.bf16.mxu1 %v1883_v14  ;;  %1563 = vmatprep.subr.bf16.mxu0 %v1885_v17 }
 0x283   :  { %1521 = vmatpush1.bf16.msra.mxu1 %v1882_v23  ;;  %1564 = vmatpush1.bf16.msra.mxu0 %v1884_v24 }
 0x284   :  { %1522 = vmatprep.subr.bf16.mxu1 %v1891_v25  ;;  %1565 = vmatprep.subr.bf16.mxu0 %v1893_v26 }
 0x287   :  { %1523 = vmatpush1.bf16.msra.mxu1 %v1890_v31  ;;  %1566 = vmatpush1.bf16.msra.mxu0 %v1892_v33 }
 0x288   :  { %1524 = vmatprep.subr.bf16.mxu1 %v1899_v34  ;;  %1567 = vmatprep.subr.bf16.mxu0 %v1901_v35 }
 0x28b   :  { %1525 = vmatpush1.bf16.msra.mxu1 %v1898_v36  ;;  %1568 = vmatpush1.bf16.msra.mxu0 %v1900_v37 }
 0x28e   :  { %1543 = vmatmul.mubr.bf16.vlgmr.msra.gmra.mrb[12].mxu1 %v2514_v46  ;;  %1586 = vmatmul.mubr.bf16.vlgmr.msra.gmra.mrb[16].mxu0 %v2514_v46 }
 0x28f   :  { %2300 = shalt.err (!%p2297_p2)
}
 0x290   :  { %s2301_s17 = scalar_lea.hbm %s2585_s9, 768 }
 0x291   :  { %p2302_p3 = scmp.ne.s32.totalorder %s2585_s9, %s2301_s17  ;;  %p2305_p4 = scmp.lt.u32.totalorder %s2301_s17, %s2585_s9 }
 0x293   :  { %p2307_p5 = pnand %p2305_p4, %p2302_p3 }
 0x295   :  { %2310 = shalt.err (!%p2307_p5)
}
 0x296   :  { %s2356_s21 = smov 384   ;;  %s2357_s22 = smov 24   ;;  %v1074_v38 = vsub.s32 2, %v2497_v15  ;;  %v2544_v39 = vld [vmem:[%s2583_s7] sm:$0xff]  ;;  %v1078_v40 = vsub.s32 3, %v2497_v15  ;;  %v1082_v21 = vsub.s32 4, %v2497_v15 }
 0x297   :  { %1737 = dma.vmem_to_hbm [thread:$0]  %s1732_s10, 768, %s2585_s9, [#allocation13], %s2356_s21, %s2356_s21, %s2357_s22   ;;  %v1067_v41 = vrot.slane %v2544_v39, %v854_v16  ;;  %v1071_v43 = vrot.slane %v2544_v39, %v858_v18  ;;  %v1090_v22 = vsub.s32 6, %v2497_v15  ;;  %v1086_v23 = vsub.s32 5, %v2497_v15 }
 0x298   :  { %v1075_v42 = vrot.slane %v2544_v39, %v1074_v38  ;;  %v1079_v44 = vrot.slane %v2544_v39, %v1078_v40  ;;  %v1094_v24 = vsub.s32 7, %v2497_v15  ;;  %v1083_v27 = vrot.slane %v2544_v39, %v1082_v21  ;;  %s2358_s7 = smov [#allocation11]  }
 0x299   :  { %v1091_v28 = vrot.slane %v2544_v39, %v1090_v22  ;;  %v1087_v30 = vrot.slane %v2544_v39, %v1086_v23  ;;  %s1719_s9 = sshll.u32 %s2358_s7, 4  ;;  %s1720_s9 = int_to_ptr.vmem [resolvable:$true] %s1719_s9 }
 0x29a   :  { %v1095_v31 = vrot.slane %v2544_v39, %v1094_v24  ;;  %s2311_s28 = scalar_lea.vmem %s1720_s9, 2048  ;;  %p2316_p7 = scmp.lt.s32.totalorder %s1720_s9, %s1720_s9 }
 0x29b   :  { %p2312_p6 = scmp.ne.s32.totalorder %s1720_s9, %s2311_s28  ;;  %p2317_p8 = scmp.lt.s32.totalorder %s2311_s28, %s2311_s28 }
 0x29d   :  { %p2318_p9 = por %p2317_p8, %p2316_p7 }
 0x29f   :  { %p2319_p10 = pnand %p2318_p9, %p2312_p6 }
 0x341   :  { %v1458_v45 = vpop.f32.mrb[8].mxu1  ;;  %v1501_v46 = vpop.f32.mrb[12].mxu0 }
 0x342   :  { %v1459_v47 = vadd.f32 %v1458_v45, %v1067_v41  ;;  %v1502_v48 = vadd.f32 %v1501_v46, %v1075_v42  ;;  %v1460_v49 = vpop.f32.mrb[9].mxu1  ;;  %v1503_v50 = vpop.f32.mrb[13].mxu0 }
 0x343   :  { %v1461_v51 = vadd.f32 %v1460_v49, %v1071_v43  ;;  %v1504_v52 = vadd.f32 %v1503_v50, %v1079_v44  ;;  %v1462_v53 = vpop.f32.mrb[10].mxu1  ;;  %v1505_v54 = vpop.f32.mrb[14].mxu0 }
 0x344   :  { %v1902_v55 = vmul.f32 -1.442695, %v1459_v47  ;;  %v1904_v16 = vmul.f32 -1.442695, %v1502_v48  ;;  %v1463_v56 = vadd.f32 %v1462_v53, %v1067_v41  ;;  %v1506_v57 = vadd.f32 %v1505_v54, %v1075_v42  ;;  %v1464_v58 = vpop.f32.mrb[11].mxu1  ;;  %v1507_v59 = vpop.f32.mrb[15].mxu0 }
 0x345   :  { %v1903_v60 = vmul.f32 -1.442695, %v1461_v51  ;;  %v1905_v18 = vmul.f32 -1.442695, %v1504_v52  ;;  %v1465_v61 = vadd.f32 %v1464_v58, %v1071_v43  ;;  %v1508_v62 = vadd.f32 %v1507_v59, %v1079_v44 }
 0x346   :  { %2115 = vpow2.f32 %v1902_v55  ;;  %v1910_v63 = vmul.f32 -1.442695, %v1463_v56  ;;  %v1912_v0 = vmul.f32 -1.442695, %v1506_v57 }
 0x347   :  { %2117 = vpow2.f32 %v1904_v16  ;;  %v1911_v1 = vmul.f32 -1.442695, %v1465_v61  ;;  %v1913_v2 = vmul.f32 -1.442695, %v1508_v62 }
 0x348   :  { %2119 = vpow2.f32 %v1903_v60 }
 0x349   :  { %2121 = vpow2.f32 %v1905_v18 }
 0x34a   :  { %2123 = vpow2.f32 %v1910_v63 }
 0x34b   :  { %2125 = vpow2.f32 %v1912_v0 }
 0x34c   :  { %2127 = vpow2.f32 %v1911_v1 }
 0x34d   :  { %2129 = vpow2.f32 %v1913_v2 }
 0x350   :  { %v2116_v3 = vpop.eup %2115 }
 0x351   :  { %v2118_v4 = vpop.eup %2117  ;;  %v1644_v5 = vadd.f32 1.0, %v2116_v3 }
 0x352   :  { %v2120_v6 = vpop.eup %2119  ;;  %v1646_v7 = vadd.f32 1.0, %v2118_v4 }
 0x353   :  { %v2122_v32 = vpop.eup %2121  ;;  %2131 = vrcp.f32 %v1644_v5  ;;  %v1645_v8 = vadd.f32 1.0, %v2120_v6 }
 0x354   :  { %v2124_v9 = vpop.eup %2123  ;;  %2133 = vrcp.f32 %v1646_v7  ;;  %v1647_v10 = vadd.f32 1.0, %v2122_v32 }
 0x355   :  { %v2126_v11 = vpop.eup %2125  ;;  %2135 = vrcp.f32 %v1645_v8  ;;  %v1652_v12 = vadd.f32 1.0, %v2124_v9 }
 0x356   :  { %v2128_v13 = vpop.eup %2127  ;;  %2137 = vrcp.f32 %v1647_v10  ;;  %v1654_v14 = vadd.f32 1.0, %v2126_v11 }
 0x357   :  { %v2130_v17 = vpop.eup %2129  ;;  %2139 = vrcp.f32 %v1652_v12  ;;  %v1653_v19 = vadd.f32 1.0, %v2128_v13 }
 0x358   :  { %2141 = vrcp.f32 %v1654_v14  ;;  %v1655_v20 = vadd.f32 1.0, %v2130_v17 }
 0x359   :  { %2143 = vrcp.f32 %v1653_v19 }
 0x35a   :  { %2145 = vrcp.f32 %v1655_v20 }
 0x35d   :  { %v2132_v25 = vpop.eup %2131 }
 0x35e   :  { %v2134_v26 = vpop.eup %2133  ;;  %1692 = vst [vmem:[#allocation11] sm:$0xff] %v2132_v25 }
 0x35f   :  { %v2136_v29 = vpop.eup %2135  ;;  %1694 = vst [vmem:[#allocation11 + $0x10] sm:$0xff] %v2134_v26 }
 0x360   :  { %v2138_v33 = vpop.eup %2137  ;;  %1693 = vst [vmem:[#allocation11 + $0x8] sm:$0xff] %v2136_v29 }
 0x361   :  { %v2140_v34 = vpop.eup %2139  ;;  %1695 = vst [vmem:[#allocation11 + $0x18] sm:$0xff] %v2138_v33  ;;  %v1544_v35 = vpop.f32.mrb[12].mxu1 }
 0x362   :  { %v1587_v36 = vpop.f32.mrb[16].mxu0  ;;  %v2142_v15 = vpop.eup %2141  ;;  %1700 = vst [vmem:[#allocation11 + $0x40] sm:$0xff] %v2140_v34  ;;  %v1545_v37 = vadd.f32 %v1544_v35, %v1083_v27 }
 0x363   :  { %v1588_v38 = vadd.f32 %v1587_v36, %v1091_v28  ;;  %v1546_v40 = vpop.f32.mrb[13].mxu1  ;;  %v1589_v41 = vpop.f32.mrb[17].mxu0  ;;  %1702 = vst [vmem:[#allocation11 + $0x50] sm:$0xff] %v2142_v15 }
 0x364   :  { %v2144_v42 = vpop.eup %2143  ;;  %v1547_v43 = vadd.f32 %v1546_v40, %v1087_v30  ;;  %v1590_v44 = vadd.f32 %v1589_v41, %v1095_v31  ;;  %v1548_v45 = vpop.f32.mrb[14].mxu1  ;;  %v1906_v39 = vmul.f32 -1.442695, %v1545_v37 }
 0x365   :  { %v1591_v46 = vpop.f32.mrb[18].mxu0  ;;  %v2146_v47 = vpop.eup %2145  ;;  %1701 = vst [vmem:[#allocation11 + $0x48] sm:$0xff] %v2144_v42  ;;  %v1908_v48 = vmul.f32 -1.442695, %v1588_v38  ;;  %v1549_v49 = vadd.f32 %v1548_v45, %v1083_v27 }
 0x366   :  { %v1592_v50 = vadd.f32 %v1591_v46, %v1091_v28  ;;  %v1550_v51 = vpop.f32.mrb[15].mxu1  ;;  %v1593_v52 = vpop.f32.mrb[19].mxu0  ;;  %1703 = vst [vmem:[#allocation11 + $0x58] sm:$0xff] %v2146_v47  ;;  %v1907_v53 = vmul.f32 -1.442695, %v1547_v43  ;;  %2147 = vpow2.f32 %v1906_v39 }
 0x367   :  { %v1909_v54 = vmul.f32 -1.442695, %v1590_v44  ;;  %v1551_v55 = vadd.f32 %v1550_v51, %v1087_v30  ;;  %v1594_v16 = vadd.f32 %v1593_v52, %v1095_v31  ;;  %v1914_v56 = vmul.f32 -1.442695, %v1549_v49 }
 0x368   :  { %2149 = vpow2.f32 %v1908_v48  ;;  %v1916_v57 = vmul.f32 -1.442695, %v1592_v50 }
 0x369   :  { %2151 = vpow2.f32 %v1907_v53  ;;  %v1915_v58 = vmul.f32 -1.442695, %v1551_v55  ;;  %v1917_v59 = vmul.f32 -1.442695, %v1594_v16 }
 0x36a   :  { %2153 = vpow2.f32 %v1909_v54 }
 0x36b   :  { %2155 = vpow2.f32 %v1914_v56 }
 0x36c   :  { %2157 = vpow2.f32 %v1916_v57 }
 0x36d   :  { %2159 = vpow2.f32 %v1915_v58 }
 0x36e   :  { %2161 = vpow2.f32 %v1917_v59 }
 0x370   :  { %v2148_v60 = vpop.eup %2147 }
 0x371   :  { %v1648_v61 = vadd.f32 1.0, %v2148_v60 }
 0x372   :  { %v2150_v18 = vpop.eup %2149 }
 0x373   :  { %v2152_v62 = vpop.eup %2151  ;;  %v1650_v63 = vadd.f32 1.0, %v2150_v18  ;;  %2163 = vrcp.f32 %v1648_v61 }
 0x374   :  { %v2154_v0 = vpop.eup %2153  ;;  %v1649_v1 = vadd.f32 1.0, %v2152_v62 }
 0x375   :  { %v2156_v2 = vpop.eup %2155  ;;  %2165 = vrcp.f32 %v1650_v63  ;;  %v1651_v3 = vadd.f32 1.0, %v2154_v0 }
 0x376   :  { %v2158_v4 = vpop.eup %2157  ;;  %2167 = vrcp.f32 %v1649_v1  ;;  %v1656_v5 = vadd.f32 1.0, %v2156_v2 }
 0x377   :  { %v2160_v6 = vpop.eup %2159  ;;  %2169 = vrcp.f32 %v1651_v3  ;;  %v1658_v7 = vadd.f32 1.0, %v2158_v4 }
 0x378   :  { %v2162_v32 = vpop.eup %2161  ;;  %2171 = vrcp.f32 %v1656_v5  ;;  %v1657_v8 = vadd.f32 1.0, %v2160_v6 }
 0x379   :  { %2173 = vrcp.f32 %v1658_v7  ;;  %v1659_v9 = vadd.f32 1.0, %v2162_v32 }
 0x37a   :  { %2175 = vrcp.f32 %v1657_v8 }
 0x37b   :  { %2177 = vrcp.f32 %v1659_v9 }
 0x37d   :  { %v2164_v10 = vpop.eup %2163 }
 0x37e   :  { %1696 = vst [vmem:[#allocation11 + $0x20] sm:$0xff] %v2164_v10 }
 0x37f   :  { %v2166_v11 = vpop.eup %2165 }
 0x380   :  { %v2168_v12 = vpop.eup %2167  ;;  %1698 = vst [vmem:[#allocation11 + $0x30] sm:$0xff] %v2166_v11 }
 0x381   :  { %v2170_v13 = vpop.eup %2169  ;;  %1697 = vst [vmem:[#allocation11 + $0x28] sm:$0xff] %v2168_v12 }
 0x382   :  { %v2172_v14 = vpop.eup %2171  ;;  %1699 = vst [vmem:[#allocation11 + $0x38] sm:$0xff] %v2170_v13 }
 0x383   :  { %v2174_v17 = vpop.eup %2173  ;;  %1704 = vst [vmem:[#allocation11 + $0x60] sm:$0xff] %v2172_v14 }
 0x384   :  { %v2176_v19 = vpop.eup %2175  ;;  %1706 = vst [vmem:[#allocation11 + $0x70] sm:$0xff] %v2174_v17 }
 0x385   :  { %v2178_v20 = vpop.eup %2177  ;;  %1705 = vst [vmem:[#allocation11 + $0x68] sm:$0xff] %v2176_v19 }
 0x386   :  { %1707 = vst [vmem:[#allocation11 + $0x78] sm:$0xff] %v2178_v20 }
 0x387   :  { %2322 = shalt.err (!%p2319_p10)
}
 0x388   :  { %s2323_s2 = scalar_lea.hbm %s2584_s8, 2048 }
 0x389   :  { %p2324_p11 = scmp.ne.s32.totalorder %s2584_s8, %s2323_s2  ;;  %p2327_p12 = scmp.lt.u32.totalorder %s2323_s2, %s2584_s8 }
 0x38b   :  { %p2329_p13 = pnand %p2327_p12, %p2324_p11 }
 0x38d   :  { %2332 = shalt.err (!%p2329_p13)
}
 0x38e   :  { %s2359_s24 = smov 1024  }
 0x38f   :  { %1725 = dma.vmem_to_hbm [thread:$0]  %s1720_s9, 2048, %s2584_s8, [#allocation4], %s2359_s24, %s2359_s24, %s2344_s19  }
 0x390   :  { %2339 = dma.done.wait [#allocation4], 2048  }
 0x391   :  { %2340 = vsyncadd [#allocation4], 4294965248 }
 0x392   :  { %2341 = dma.done.wait [#allocation13], 768  }
 0x393   :  { %2342 = vsyncadd [#allocation13], 4294966528 }
 0x394   :  { %1744 = vsyncpa [#allocation3], 1 }
 0x395   :  { %1745 = vsyncpa [#allocation6], 1 }
 0x396   :  { %1746 = vsyncpa [#allocation9], 1 }
 0x397   :  { %1747 = vsyncpa [#allocation4], 1 }
 0x398   :  { %1748 = vsyncpa [#allocation13], 1 }

</bundles_post_ra>
